<compile_context>
chip_gen: v7x
topology: tpu7x:2x2x1
jax: 0.10.0
libtpu: 0.0.40
codegen_flags: <defaults>
</compile_context>

<pallas_src>
import functools

import jax
import jax.numpy as jnp
from jax.experimental import pallas as pl
from jax.experimental.pallas import tpu as pltpu


# ---------------------------------------------------------------------------
# Kernels
# ---------------------------------------------------------------------------

def _sdpa_dense_kernel(q_ref, k_ref, v_ref, o_ref, *, inv_temper):
    """One grid step = `block_b` batch elements, full (Lq, Lk) scores."""
    q = q_ref[...]                                        # (Bt, Lq, d_k)
    k = k_ref[...]                                        # (Bt, Lk, d_k)
    v = v_ref[...]                                        # (Bt, Lk, d_v)

    # Contract last dims directly (no materialized k-transpose), f32 acc.
    s = jnp.einsum("bqd,bkd->bqk", q, k,
                   preferred_element_type=jnp.float32)    # (Bt, Lq, Lk)
    s = s * jnp.float32(inv_temper)

    # Numerically-stable softmax (matches torch.softmax); exact divide.
    s = s - jnp.max(s, axis=-1, keepdims=True)
    p = jnp.exp(s)
    p = p / jnp.sum(p, axis=-1, keepdims=True)

    # TODO(synk): nn.Dropout(attn_dropout) omitted — eval-mode identity.

    out = jnp.einsum("bqk,bkv->bqv", p.astype(v.dtype), v,
                     preferred_element_type=jnp.float32)  # (Bt, Lq, d_v)
    o_ref[...] = out.astype(o_ref.dtype)


def _sdpa_flash_kernel(q_ref, k_ref, v_ref, o_ref, m_sc, l_sc, acc_sc, *,
                       inv_temper):
    """Flash-style KV tiling with online softmax for long Lk.

    Grid = (batch tiles, KV tiles); the KV axis is last / "arbitrary" and the
    output block stays resident across it.  Scratch holds the running max (m),
    denominator (l) and un-normalized accumulator (acc) in f32 VMEM.
    """
    kv = pl.program_id(1)

    @pl.when(kv == 0)
    def _():
        m_sc[...] = jnp.full(m_sc.shape, -jnp.inf, dtype=jnp.float32)
        l_sc[...] = jnp.zeros(l_sc.shape, dtype=jnp.float32)
        acc_sc[...] = jnp.zeros(acc_sc.shape, dtype=jnp.float32)

    q = q_ref[...]                                        # (Bt, Lq, d_k)
    k = k_ref[...]                                        # (Bt, Tkv, d_k)
    v = v_ref[...]                                        # (Bt, Tkv, d_v)

    s = jnp.einsum("bqd,bkd->bqk", q, k,
                   preferred_element_type=jnp.float32)    # (Bt, Lq, Tkv)
    s = s * jnp.float32(inv_temper)

    m_prev = m_sc[...]
    m_new = jnp.maximum(m_prev, jnp.max(s, axis=-1, keepdims=True))
    alpha = jnp.exp(m_prev - m_new)
    p = jnp.exp(s - m_new)

    l_sc[...] = alpha * l_sc[...] + jnp.sum(p, axis=-1, keepdims=True)
    acc_sc[...] = alpha * acc_sc[...] + jnp.einsum(
        "bqk,bkv->bqv", p.astype(v.dtype), v,
        preferred_element_type=jnp.float32)
    m_sc[...] = m_new

    # TODO(synk): nn.Dropout(attn_dropout) omitted — eval-mode identity.

    @pl.when(kv == pl.num_programs(1) - 1)
    def _():
        o_ref[...] = (acc_sc[...] / l_sc[...]).astype(o_ref.dtype)


# ---------------------------------------------------------------------------
# Generation-aware tiling helpers
# ---------------------------------------------------------------------------

def _tpu_generation_info():
    """(tensorcores_per_chip, usable_vmem_bytes) from the default device.

    v7x: 2 TCs, 64 MiB VMEM -> keep an even grid split, budget ~48 MiB.
    v4 / v5p (megacore): 2 TCs, 128 MiB.
    v5e / v6e: 1 TC, 128 MiB -> prefer the largest block (grid=(1,)).
    Misclassification only costs performance, never correctness.
    """
    try:
        kind = jax.devices()[0].device_kind.lower()
    except Exception:  # no backend yet / CPU interpret — be conservative.
        kind = ""
    if "v7" in kind:
        return 2, 48 * 1024 * 1024
    if "v4" in kind or "v5p" in kind:
        return 2, 96 * 1024 * 1024
    return 1, 96 * 1024 * 1024


def _per_batch_vmem_bytes(Lq, kv_tile, d_k, d_v, itemsize, dense):
    """VMEM footprint of one batch element of the chosen kernel."""
    # Q/K/V/O blocks, double-buffered by the pipeline.
    io = 2 * itemsize * (Lq * d_k + kv_tile * d_k + kv_tile * d_v + Lq * d_v)
    # f32 scores + exp intermediate.
    scores = 2 * 4 * Lq * kv_tile
    # Online-softmax scratch for the flash path (m/l lane-pad to 128).
    scratch = 0 if dense else 4 * (Lq * d_v + 2 * Lq * 128)
    return io + scores + scratch


def _pick_tiles(B, per_batch_bytes, vmem_budget, num_cores):
    """Largest block_b that fits the VMEM budget (2x safety factor), keeping
    at least one grid step per TensorCore on multi-TC parts."""
    cap = max(1, min(B, vmem_budget // (2 * per_batch_bytes)))
    num_tiles = pl.cdiv(B, cap)
    if num_cores > 1:
        num_tiles = max(num_tiles, num_cores)
        num_tiles = pl.cdiv(num_tiles, num_cores) * num_cores
    block_b = pl.cdiv(B, num_tiles)
    return block_b, num_tiles


def _pick_block_kv(Lk, target=512):
    """Largest divisor of Lk that is <= target and a multiple of 8, so the MXU
    contraction stays wide without needing a masked ragged tail."""
    best = None
    for d in range(8, min(Lk, target) + 1, 8):
        if Lk % d == 0:
            best = d
    # TODO(synk): awkward (e.g. prime) large Lk falls back to a single dense
    # KV tile; a masked tail would be needed to tile those.
    return best if best is not None else Lk


# ---------------------------------------------------------------------------
# Wrapper
# ---------------------------------------------------------------------------

def scaled_dot_product_attention(q, k, v, *, d_model=None, block_b=None,
                                 block_kv=None):
    """q: (B, Lq, d_k); k: (B, Lk, d_k); v: (B, Lk, d_v).  B = batch * n_head."""
    B, Lq, d_k = q.shape
    Bk, Lk, d_k2 = k.shape
    Bv, Lv, d_v = v.shape
    assert B == Bk == Bv and d_k == d_k2 and Lk == Lv

    if d_model is None:
        d_model = d_k
    inv_temper = 1.0 / (float(d_model) ** 0.5)

    # Dense (Lq, Lk) scores for short sequences; flash KV tiling for long Lk.
    if block_kv is None:
        dense = Lk <= 512
        if not dense:
            block_kv = _pick_block_kv(Lk)
            dense = block_kv >= Lk
    else:
        assert Lk % block_kv == 0, "block_kv must divide Lk"
        dense = block_kv >= Lk

    num_cores, vmem_budget = _tpu_generation_info()
    itemsize = max(q.dtype.itemsize, v.dtype.itemsize)
    kv_tile = Lk if dense else block_kv
    per_b = _per_batch_vmem_bytes(Lq, kv_tile, d_k, d_v, itemsize, dense)

    if block_b is None:
        block_b, num_b_tiles = _pick_tiles(B, per_b, vmem_budget, num_cores)
    else:
        num_b_tiles = pl.cdiv(B, block_b)

    # cdiv tiling + batch padding instead of requiring B % block_b == 0 —
    # awkward B no longer degenerates to block_b = 1.  Padded (zero) rows are
    # harmless through softmax and are sliced off below.
    B_pad = block_b * num_b_tiles
    if B_pad != B:
        pad = ((0, B_pad - B), (0, 0), (0, 0))
        q_in, k_in, v_in = jnp.pad(q, pad), jnp.pad(k, pad), jnp.pad(v, pad)
    else:
        q_in, k_in, v_in = q, k, v

    # Explicit VMEM limit documenting the real footprint (3x margin for
    # compiler temporaries), clamped to the per-generation usable budget.
    vmem_limit = int(min(vmem_budget,
                         max(3 * block_b * per_b, 32 * 1024 * 1024)))

    out_shape = jax.ShapeDtypeStruct((B_pad, Lq, d_v), q.dtype)

    if dense:
        out = pl.pallas_call(
            functools.partial(_sdpa_dense_kernel, inv_temper=inv_temper),
            out_shape=out_shape,
            grid_spec=pltpu.PrefetchScalarGridSpec(
                num_scalar_prefetch=0,
                grid=(num_b_tiles,),
                in_specs=[
                    pl.BlockSpec((block_b, Lq, d_k), lambda b: (b, 0, 0)),
                    pl.BlockSpec((block_b, Lk, d_k), lambda b: (b, 0, 0)),
                    pl.BlockSpec((block_b, Lk, d_v), lambda b: (b, 0, 0)),
                ],
                out_specs=pl.BlockSpec((block_b, Lq, d_v), lambda b: (b, 0, 0)),
            ),
            compiler_params=pltpu.CompilerParams(
                dimension_semantics=("parallel",),
                vmem_limit_bytes=vmem_limit,
            ),
        )(q_in, k_in, v_in)
    else:
        num_kv_tiles = Lk // block_kv
        out = pl.pallas_call(
            functools.partial(_sdpa_flash_kernel, inv_temper=inv_temper),
            out_shape=out_shape,
            grid_spec=pltpu.PrefetchScalarGridSpec(
                num_scalar_prefetch=0,
                grid=(num_b_tiles, num_kv_tiles),
                in_specs=[
                    pl.BlockSpec((block_b, Lq, d_k), lambda b, kv: (b, 0, 0)),
                    pl.BlockSpec((block_b, block_kv, d_k),
                                 lambda b, kv: (b, kv, 0)),
                    pl.BlockSpec((block_b, block_kv, d_v),
                                 lambda b, kv: (b, kv, 0)),
                ],
                out_specs=pl.BlockSpec((block_b, Lq, d_v),
                                       lambda b, kv: (b, 0, 0)),
                scratch_shapes=[
                    pltpu.VMEM((block_b, Lq, 1), jnp.float32),    # m
                    pltpu.VMEM((block_b, Lq, 1), jnp.float32),    # l
                    pltpu.VMEM((block_b, Lq, d_v), jnp.float32),  # acc
                ],
            ),
            compiler_params=pltpu.CompilerParams(
                dimension_semantics=("parallel", "arbitrary"),
                vmem_limit_bytes=vmem_limit,
            ),
        )(q_in, k_in, v_in)

    return out[:B] if B_pad != B else out


def _reference(q, k, v, d_model):
    """Pure-JAX reference mirroring the PyTorch forward (eval mode)."""
    temper = jnp.float32(d_model) ** 0.5
    attn = jnp.einsum("bqd,bkd->bqk", q.astype(jnp.float32),
                      k.astype(jnp.float32)) / temper
    attn = jax.nn.softmax(attn, axis=-1)
    return jnp.einsum("bqk,bkv->bqv", attn, v.astype(jnp.float32))


if __name__ == "__main__":
    # Small shapes consistent with the module's torch.bmm usage:
    # B = batch * n_head = 2 * 4, short sequence, lane-dense head dims.
    batch, n_head = 2, 4
    B = batch * n_head
    Lq = Lk = 16
    d_k = d_v = 128
    d_model = 128            # temper = sqrt(d_model), as in the constructor

    key = jax.random.PRNGKey(0)
    kq, kk, kv = jax.random.split(key, 3)
    q = jax.random.normal(kq, (B, Lq, d_k), dtype=jnp.float32)
    k = jax.random.normal(kk, (B, Lk, d_k), dtype=jnp.float32)
    v = jax.random.normal(kv, (B, Lk, d_v), dtype=jnp.float32)

    ref = _reference(q, k, v, d_model)

    # 1) Default path: dense scores, batch tiling sized from the VMEM budget
    #    (grid=(1,) on single-TC chips, even split on 2-TC chips).
    out = jax.block_until_ready(
        scaled_dot_product_attention(q, k, v, d_model=d_model))
    assert out.shape == (B, Lq, d_v)
    assert jnp.allclose(out, ref, rtol=1e-2, atol=1e-2), "dense path mismatch"

    # 2) Flash-tiled path (online softmax over KV tiles), forced with a small
    #    block_kv so the long-sequence code path is exercised at small shapes.
    out_f = jax.block_until_ready(
        scaled_dot_product_attention(q, k, v, d_model=d_model, block_kv=8))
    assert jnp.allclose(out_f, ref, rtol=1e-2, atol=1e-2), "flash path mismatch"

    # 3) Awkward batch count: exercises the cdiv + pad tail handling.
    out7 = jax.block_until_ready(
        scaled_dot_product_attention(q[:7], k[:7], v[:7],
                                     d_model=d_model, block_b=4))
    assert out7.shape == (7, Lq, d_v)
    assert jnp.allclose(out7, ref[:7], rtol=1e-2, atol=1e-2), "tail path mismatch"

    print("KERNEL_OK")
</pallas_src>

<mosaic_0001>
module attributes {stable_mosaic.version = 11 : i64} {
  func.func @_sdpa_dense_kernel(%arg0: i32, %arg1: memref<8x16x128xf32, #tpu.memory_space<vmem>>, %arg2: memref<8x16x128xf32, #tpu.memory_space<vmem>>, %arg3: memref<8x16x128xf32, #tpu.memory_space<vmem>>, %arg4: memref<8x16x128xf32, #tpu.memory_space<vmem>>) attributes {dimension_semantics = [#tpu.dimension_semantics<parallel>], iteration_bounds = array<i64: 1>, scalar_prefetch = 0 : i64, scratch_operands = 0 : i64, tpu.core_type = #tpu.core_type<tc>, window_params = [{transform_indices = @transform_0, window_bounds = array<i64: 8, 16, 128>}, {transform_indices = @transform_1, window_bounds = array<i64: 8, 16, 128>}, {transform_indices = @transform_2, window_bounds = array<i64: 8, 16, 128>}, {transform_indices = @transform_3, window_bounds = array<i64: 8, 16, 128>}]} {
    %c0 = arith.constant 0 : index
    %c0_0 = arith.constant 0 : index
    %c0_1 = arith.constant 0 : index
    %0 = vector.load %arg1[%c0, %c0_0, %c0_1] : memref<8x16x128xf32, #tpu.memory_space<vmem>>, vector<8x16x128xf32>
    %c0_2 = arith.constant 0 : index
    %c0_3 = arith.constant 0 : index
    %c0_4 = arith.constant 0 : index
    %1 = vector.load %arg2[%c0_2, %c0_3, %c0_4] : memref<8x16x128xf32, #tpu.memory_space<vmem>>, vector<8x16x128xf32>
    %c0_5 = arith.constant 0 : index
    %c0_6 = arith.constant 0 : index
    %c0_7 = arith.constant 0 : index
    %2 = vector.load %arg3[%c0_5, %c0_6, %c0_7] : memref<8x16x128xf32, #tpu.memory_space<vmem>>, vector<8x16x128xf32>
    "tpu.trace_start"() <{level = 10 : i32, message = "bqd,bkd->bqk"}> : () -> ()
    %cst = arith.constant dense<0.000000e+00> : vector<8x16x16xf32>
    %3 = tpu.matmul %0, %1, %cst {dimension_numbers = #tpu.dot_dimension_numbers<[2], [2], [1], [1], [0, 0, 0, 1, 1, 1], [0], [0]>} : vector<8x16x128xf32>, vector<8x16x128xf32>, vector<8x16x16xf32> -> vector<8x16x16xf32>
    "tpu.trace_stop"() : () -> ()
    %cst_8 = arith.constant 0.0883883461 : f32
    %4 = vector.broadcast %cst_8 : f32 to vector<8x16x16xf32>
    %5 = arith.mulf %3, %4 : vector<8x16x16xf32>
    %cst_9 = arith.constant dense<0xFF800000> : vector<8x16xf32>
    %6 = vector.multi_reduction <maximumf>, %5, %cst_9 [2] : vector<8x16x16xf32> to vector<8x16xf32>
    %7 = vector.shape_cast %6 : vector<8x16xf32> to vector<8x16x1xf32>
    %8 = vector.broadcast %7 : vector<8x16x1xf32> to vector<8x16x16xf32>
    %9 = arith.subf %5, %8 : vector<8x16x16xf32>
    %10 = math.exp %9 : vector<8x16x16xf32>
    %cst_10 = arith.constant dense<0.000000e+00> : vector<8x16xf32>
    %11 = vector.multi_reduction <add>, %10, %cst_10 [2] : vector<8x16x16xf32> to vector<8x16xf32>
    %12 = vector.shape_cast %11 : vector<8x16xf32> to vector<8x16x1xf32>
    %13 = vector.broadcast %12 : vector<8x16x1xf32> to vector<8x16x16xf32>
    %14 = arith.divf %10, %13 : vector<8x16x16xf32>
    "tpu.trace_start"() <{level = 10 : i32, message = "bqk,bkv->bqv"}> : () -> ()
    %cst_11 = arith.constant dense<0.000000e+00> : vector<8x16x128xf32>
    %15 = tpu.matmul %14, %2, %cst_11 {dimension_numbers = #tpu.dot_dimension_numbers<[2], [1], [1], [2], [0, 0, 0, 1, 1, 2], [0], [0]>} : vector<8x16x16xf32>, vector<8x16x128xf32>, vector<8x16x128xf32> -> vector<8x16x128xf32>
    "tpu.trace_stop"() : () -> ()
    %c0_12 = arith.constant 0 : index
    %c0_13 = arith.constant 0 : index
    %c0_14 = arith.constant 0 : index
    %16 = vector.load %arg4[%c0_12, %c0_13, %c0_14] : memref<8x16x128xf32, #tpu.memory_space<vmem>>, vector<8x16x128xf32>
    tpu.vector_store %arg4[%c0_12, %c0_13, %c0_14], %15 {strides = array<i32>} : memref<8x16x128xf32, #tpu.memory_space<vmem>>, vector<8x16x128xf32>,
    return
  }
  func.func @transform_0(%arg0: i32) -> (i32, i32, i32) {
    %c0_i32 = arith.constant 0 : i32
    %c0_i32_0 = arith.constant 0 : i32
    %c0_i32_1 = arith.constant 0 : i32
    return %arg0, %c0_i32, %c0_i32_0 : i32, i32, i32
  }
  func.func @transform_1(%arg0: i32) -> (i32, i32, i32) {
    %c0_i32 = arith.constant 0 : i32
    %c0_i32_0 = arith.constant 0 : i32
    %c0_i32_1 = arith.constant 0 : i32
    return %arg0, %c0_i32, %c0_i32_0 : i32, i32, i32
  }
  func.func @transform_2(%arg0: i32) -> (i32, i32, i32) {
    %c0_i32 = arith.constant 0 : i32
    %c0_i32_0 = arith.constant 0 : i32
    %c0_i32_1 = arith.constant 0 : i32
    return %arg0, %c0_i32, %c0_i32_0 : i32, i32, i32
  }
  func.func @transform_3(%arg0: i32) -> (i32, i32, i32) {
    %c0_i32 = arith.constant 0 : i32
    %c0_i32_0 = arith.constant 0 : i32
    %c0_i32_1 = arith.constant 0 : i32
    return %arg0, %c0_i32, %c0_i32_0 : i32, i32, i32
  }
}

</mosaic_0001>

<bundles_post_ra>
// kernel: tpu_custom_call.1
= control target key start
LH: loop header
LB: loop body
LE: loop exit
PB: predicated region body
PF: predicated region fallthrough
CT: control target
= control target key end

     0   :  { %8 = vsyncpa [#allocation3], 0  ;;  %s2268_s0 = inlined_call_operand.hbm [shape: f32[8,16,128], index: 0, kind: input, shape index: {}]   ;;  %s2269_s1 = inlined_call_operand.hbm [shape: f32[8,16,128], index: 1, kind: input, shape index: {}]   ;;  %s2270_s2 = inlined_call_operand.hbm [shape: f32[8,16,128], index: 2, kind: input, shape index: {}]   ;;  %s2271_s3 = inlined_call_operand.hbm [shape: f32[8,16,128], index: 3, kind: output, shape index: {}]  }
   0x1   :  { %9 = vsyncpa [#allocation6], 0 }
   0x2   :  { %10 = vsyncpa [#allocation4], 0  ;;  %s1999_s12 = smov [#allocation5]   ;;  %s2000_s14 = smov [#allocation2]  }
   0x3   :  { %s28_s13 = sshll.u32 %s1999_s12, 4  ;;  %s16_s15 = sshll.u32 %s2000_s14, 4  ;;  %s29_s13 = int_to_ptr.vmem [resolvable:$true] %s28_s13  ;;  %s2025_s15 = int_to_ptr.vmem [resolvable:$true] %s16_s15 }
   0x4   :  { %s1905_s18 = scalar_lea.hbm %s2269_s1, 2048 }
   0x5   :  { %p1906_p0 = scmp.ne.s32.totalorder %s2269_s1, %s1905_s18  ;;  %p1909_p1 = scmp.lt.u32.totalorder %s1905_s18, %s2269_s1 }
   0x7   :  { %p1911_p2 = pnand %p1909_p1, %p1906_p0 }
   0x9   :  { %1914 = shalt.err (!%p1911_p2)
}
   0xa   :  { %s1915_s23 = scalar_lea.vmem %s29_s13, 2048  ;;  %p1920_p4 = scmp.lt.s32.totalorder %s29_s13, %s29_s13 }
   0xb   :  { %p1916_p3 = scmp.ne.s32.totalorder %s29_s13, %s1915_s23  ;;  %p1921_p5 = scmp.lt.s32.totalorder %s1915_s23, %s1915_s23 }
   0xd   :  { %p1922_p6 = por %p1921_p5, %p1920_p4 }
   0xf   :  { %p1923_p7 = pnand %p1922_p6, %p1916_p3 }
  0x11   :  { %1926 = shalt.err (!%p1923_p7)
}
  0x12   :  { %s2001_s24 = smov 128   ;;  %s2002_s25 = smov 8  }
  0x13   :  { %34 = dma.hbm_to_vmem [thread:$0]  %s2269_s1, 2048, %s29_s13, [#allocation6], %s2001_s24, %s2001_s24, %s2002_s25  }
  0x14   :  { %s1927_s30 = scalar_lea.hbm %s2268_s0, 2048 }
  0x15   :  { %p1928_p8 = scmp.ne.s32.totalorder %s2268_s0, %s1927_s30  ;;  %p1931_p9 = scmp.lt.u32.totalorder %s1927_s30, %s2268_s0 }
  0x17   :  { %p1933_p10 = pnand %p1931_p9, %p1928_p8 }
  0x19   :  { %1936 = shalt.err (!%p1933_p10)
}
  0x1a   :  { %s1937_s8 = scalar_lea.vmem %s2025_s15, 2048  ;;  %p1942_p12 = scmp.lt.s32.totalorder %s2025_s15, %s2025_s15 }
  0x1b   :  { %p1938_p11 = scmp.ne.s32.totalorder %s2025_s15, %s1937_s8  ;;  %p1943_p13 = scmp.lt.s32.totalorder %s1937_s8, %s1937_s8 }
  0x1d   :  { %p1944_p0 = por %p1943_p13, %p1942_p12 }
  0x1f   :  { %p1945_p1 = pnand %p1944_p0, %p1938_p11 }
  0x21   :  { %1948 = shalt.err (!%p1945_p1)
}
  0x22   :  { %22 = dma.hbm_to_vmem [thread:$0]  %s2268_s0, 2048, %s2025_s15, [#allocation3], %s2001_s24, %s2001_s24, %s2002_s25  }
  0x23   :  { %s2003_s10 = smov [#allocation7]   ;;  %s1949_s14 = scalar_lea.hbm %s2270_s2, 2048 }
  0x24   :  { %s40_s11 = sshll.u32 %s2003_s10, 4  ;;  %p1950_p2 = scmp.ne.s32.totalorder %s2270_s2, %s1949_s14  ;;  %s41_s11 = int_to_ptr.vmem [resolvable:$true] %s40_s11 }
  0x25   :  { %p1953_p3 = scmp.lt.u32.totalorder %s1949_s14, %s2270_s2 }
  0x27   :  { %p1955_p4 = pnand %p1953_p3, %p1950_p2 }
  0x29   :  { %1958 = shalt.err (!%p1955_p4)
}
  0x2a   :  { %s1959_s20 = scalar_lea.vmem %s41_s11, 2048  ;;  %p1964_p6 = scmp.lt.s32.totalorder %s41_s11, %s41_s11 }
  0x2b   :  { %p1960_p5 = scmp.ne.s32.totalorder %s41_s11, %s1959_s20  ;;  %p1965_p7 = scmp.lt.s32.totalorder %s1959_s20, %s1959_s20 }
  0x2d   :  { %p1966_p8 = por %p1965_p7, %p1964_p6 }
  0x2f   :  { %p1967_p9 = pnand %p1966_p8, %p1960_p5 }
  0x31   :  { %1970 = shalt.err (!%p1967_p9)
}
  0x32   :  { %46 = dma.hbm_to_vmem [thread:$0]  %s2270_s2, 2048, %s41_s11, [#allocation6], %s2001_s24, %s2001_s24, %s2002_s25  }
  0x33   :  { %1993 = dma.done.wait [#allocation3], 2048  }
  0x34   :  { %1994 = vsyncadd [#allocation3], 4294965248 }
  0x35   :  { %1995 = dma.done.wait [#allocation6], 4096  }
  0x36   :  { %1996 = vsyncadd [#allocation6], 4294963200  ;;  %v72_v0 = vld [vmem:[#allocation5] sm:$0xff]  ;;  %v73_v1 = vld [vmem:[#allocation5 + $0x8] sm:$0xff]  ;;  %vm720_vm0 = vcmask 130048   ;;  %s2004_s2 = smov [#allocation8]  }
  0x37   :  { %v74_v2 = vld [vmem:[#allocation5 + $0x10] sm:$0xff]  ;;  %v1771_v3 = vpack.c.bf16 %v73_v1, %v72_v0  ;;  %v75_v4 = vld [vmem:[#allocation5 + $0x18] sm:$0xff]  ;;  %v56_v5 = vld [vmem:[#allocation2] sm:$0xff]  ;;  %s1566_s21 = sshll.u32 %s2004_s2, 4  ;;  %s1567_s21 = int_to_ptr.vmem [resolvable:$true] %s1566_s21 }
  0x38   :  { %v1775_v6 = vpack.c.bf16 %v75_v4, %v74_v2  ;;  %1663 = vmatprep.mubr.f32.mxu0 %v56_v5  ;;  %v58_v7 = vld [vmem:[#allocation2 + $0x10] sm:$0xff]  ;;  %v76_v8 = vld [vmem:[#allocation5 + $0x20] sm:$0xff]  ;;  %v77_v9 = vld [vmem:[#allocation5 + $0x28] sm:$0xff]  ;;  %s1971_s22 = scalar_lea.vmem %s1567_s21, 2048  ;;  %p1976_p11 = scmp.lt.s32.totalorder %s1567_s21, %s1567_s21 }
  0x39   :  { %1772 = vmatprep.subr.bf16.mxu0 %v1771_v3  ;;  %1670 = vmatprep.mubr.f32.mxu1 %v58_v7  ;;  %v1779_v10 = vpack.c.bf16 %v77_v9, %v76_v8  ;;  %v78_v11 = vld [vmem:[#allocation5 + $0x30] sm:$0xff]  ;;  %v79_v12 = vld [vmem:[#allocation5 + $0x38] sm:$0xff]  ;;  %v80_v14 = vld [vmem:[#allocation5 + $0x40] sm:$0xff]  ;;  %p1972_p10 = scmp.ne.s32.totalorder %s1567_s21, %s1971_s22  ;;  %p1977_p12 = scmp.lt.s32.totalorder %s1971_s22, %s1971_s22 }
  0x3a   :  { %1776 = vmatprep.subr.bf16.mxu1 %v1775_v6  ;;  %1774 = vmatpush3.bf16.xpose.msra.mxu0 %v1771_v3  ;;  %v1783_v13 = vpack.c.bf16 %v79_v12, %v78_v11  ;;  %v81_v15 = vld [vmem:[#allocation5 + $0x48] sm:$0xff]  ;;  %v82_v17 = vld [vmem:[#allocation5 + $0x50] sm:$0xff]  ;;  %v83_v18 = vld [vmem:[#allocation5 + $0x58] sm:$0xff] }
  0x3b   :  { %1778 = vmatpush3.bf16.xpose.msra.mxu1 %v1775_v6  ;;  %1780 = vmatprep.subr.bf16.mxu0 %v1779_v10  ;;  %v57_v16 = vld [vmem:[#allocation2 + $0x8] sm:$0xff]  ;;  %v59_v19 = vld [vmem:[#allocation2 + $0x18] sm:$0xff]  ;;  %v62_v20 = vld [vmem:[#allocation2 + $0x30] sm:$0xff]  ;;  %v1787_v21 = vpack.c.bf16 %v81_v15, %v80_v14  ;;  %v1791_v23 = vpack.c.bf16 %v83_v18, %v82_v17  ;;  %p1978_p13 = por %p1977_p12, %p1976_p11 }
  0x3c   :  { %1784 = vmatprep.subr.bf16.mxu1 %v1783_v13  ;;  %v60_v22 = vld [vmem:[#allocation2 + $0x20] sm:$0xff]  ;;  %v85_v25 = vld [vmem:[#allocation5 + $0x68] sm:$0xff]  ;;  %v86_v27 = vld [vmem:[#allocation5 + $0x70] sm:$0xff] }
  0x3d   :  { %v84_v24 = vld [vmem:[#allocation5 + $0x60] sm:$0xff]  ;;  %v61_v26 = vld [vmem:[#allocation2 + $0x28] sm:$0xff]  ;;  %v87_v28 = vld [vmem:[#allocation5 + $0x78] sm:$0xff]  ;;  %p1979_p0 = pnand %p1978_p13, %p1972_p10 }
  0x3e   :  { %v63_v29 = vld [vmem:[#allocation2 + $0x38] sm:$0xff]  ;;  %v66_v30 = vld [vmem:[#allocation2 + $0x50] sm:$0xff]  ;;  %v1795_v31 = vpack.c.bf16 %v85_v25, %v84_v24  ;;  %v64_v32 = vld [vmem:[#allocation2 + $0x40] sm:$0xff]  ;;  %v1799_v33 = vpack.c.bf16 %v87_v28, %v86_v27 }
  0x3f   :  { %v65_v34 = vld [vmem:[#allocation2 + $0x48] sm:$0xff]  ;;  %v67_v35 = vld [vmem:[#allocation2 + $0x58] sm:$0xff]  ;;  %v68_v36 = vld [vmem:[#allocation2 + $0x60] sm:$0xff] }
  0x40   :  { %v70_v37 = vld [vmem:[#allocation2 + $0x70] sm:$0xff]  ;;  %v69_v38 = vld [vmem:[#allocation2 + $0x68] sm:$0xff]  ;;  %v71_v39 = vld [vmem:[#allocation2 + $0x78] sm:$0xff] }
  0x41   :  { %1664 = vmatmul.mubr.f32.vlgmr.msra.gmra.mrb[0].mxu0 %v57_v16 }
  0x42   :  { %1671 = vmatmul.mubr.f32.vlgmr.msra.gmra.mrb[0].mxu1 %v59_v19  ;;  %1782 = vmatpush3.bf16.xpose.msra.mxu0 %v1779_v10 }
  0x43   :  { %1786 = vmatpush3.bf16.xpose.msra.mxu1 %v1783_v13  ;;  %1684 = vmatprep.mubr.f32.mxu1 %v62_v20 }
  0x44   :  { %1677 = vmatprep.mubr.f32.mxu0 %v60_v22  ;;  %1788 = vmatprep.subr.bf16.mxu0 %v1787_v21 }
  0x45   :  { %1792 = vmatprep.subr.bf16.mxu1 %v1791_v23 }
  0x49   :  { %1678 = vmatmul.mubr.f32.vlgmr.msra.gmra.mrb[2].mxu0 %v61_v26 }
  0x4a   :  { %1685 = vmatmul.mubr.f32.vlgmr.msra.gmra.mrb[2].mxu1 %v63_v29  ;;  %1790 = vmatpush3.bf16.xpose.msra.mxu0 %v1787_v21 }
  0x4b   :  { %1794 = vmatpush3.bf16.xpose.msra.mxu1 %v1791_v23  ;;  %1698 = vmatprep.mubr.f32.mxu1 %v66_v30 }
  0x4c   :  { %1691 = vmatprep.mubr.f32.mxu0 %v64_v32  ;;  %1796 = vmatprep.subr.bf16.mxu0 %v1795_v31 }
  0x4d   :  { %1800 = vmatprep.subr.bf16.mxu1 %v1799_v33 }
  0x51   :  { %1692 = vmatmul.mubr.f32.vlgmr.msra.gmra.mrb[4].mxu0 %v65_v34 }
  0x52   :  { %1699 = vmatmul.mubr.f32.vlgmr.msra.gmra.mrb[4].mxu1 %v67_v35  ;;  %1798 = vmatpush3.bf16.xpose.msra.mxu0 %v1795_v31 }
  0x53   :  { %1802 = vmatpush3.bf16.xpose.msra.mxu1 %v1799_v33  ;;  %1705 = vmatprep.mubr.f32.mxu0 %v68_v36 }
  0x54   :  { %1712 = vmatprep.mubr.f32.mxu1 %v70_v37 }
  0x59   :  { %1706 = vmatmul.mubr.f32.vlgmr.msra.gmra.mrb[6].mxu0 %v69_v38 }
  0x5a   :  { %1713 = vmatmul.mubr.f32.vlgmr.msra.gmra.mrb[6].mxu1 %v71_v39 }
 0x114   :  { %v1665_v40 = vpop.f32.mrb[0].mxu0 }
 0x115   :  { %v2077_v41 = vmul.f32 0.088388346, %v1665_v40  ;;  %v170_v42 = vpop.f32.mrb[1].mxu0  ;;  %v1672_v43 = vpop.f32.mrb[0].mxu1 }
 0x116   :  { %v2079_v44 = vmul.f32 0.088388346, %v170_v42  ;;  %v2081_v45 = vmul.f32 0.088388346, %v1672_v43  ;;  %v245_v46 = vpop.f32.mrb[1].mxu1 }
 0x117   :  { %v2083_v47 = vmul.f32 0.088388346, %v245_v46  ;;  %v724_v48 = vsel %vm720_vm0, %v2077_v41, -inf }
 0x118   :  { %725 = vmax.xlane.f32.xlu1 %v724_v48  ;;  %v721_v49 = vsel %vm720_vm0, %v2079_v44, -inf  ;;  %v730_v50 = vsel %vm720_vm0, %v2081_v45, -inf }
 0x119   :  { %722 = vmax.xlane.f32.xlu0 %v721_v49  ;;  %v727_v51 = vsel %vm720_vm0, %v2083_v47, -inf }
 0x11c   :  { %731 = vmax.xlane.f32.xlu1 %v730_v50  ;;  %v1679_v52 = vpop.f32.mrb[2].mxu0 }
 0x11d   :  { %v1686_v53 = vpop.f32.mrb[2].mxu1  ;;  %728 = vmax.xlane.f32.xlu0 %v727_v51  ;;  %v2093_v54 = vmul.f32 0.088388346, %v1679_v52  ;;  %v320_v55 = vpop.f32.mrb[3].mxu0 }
 0x11e   :  { %v2095_v56 = vmul.f32 0.088388346, %v1686_v53  ;;  %v395_v57 = vpop.f32.mrb[3].mxu1  ;;  %v2097_v58 = vmul.f32 0.088388346, %v320_v55 }
 0x11f   :  { %v2099_v59 = vmul.f32 0.088388346, %v395_v57  ;;  %v736_v60 = vsel %vm720_vm0, %v2093_v54, -inf }
 0x120   :  { %v742_v61 = vsel %vm720_vm0, %v2095_v56, -inf  ;;  %v733_v63 = vsel %vm720_vm0, %v2097_v58, -inf }
 0x121   :  { %743 = vmax.xlane.f32.xlu1 %v742_v61  ;;  %737 = vmax.xlane.f32.xlu0 %v736_v60  ;;  %v739_v62 = vsel %vm720_vm0, %v2099_v59, -inf }
 0x124   :  { %v1693_v0 = vpop.f32.mrb[4].mxu0 }
 0x125   :  { %v1700_v1 = vpop.f32.mrb[4].mxu1  ;;  %740 = vmax.xlane.f32.xlu1 %v739_v62  ;;  %734 = vmax.xlane.f32.xlu0 %v733_v63  ;;  %v2109_v2 = vmul.f32 0.088388346, %v1693_v0  ;;  %v470_v3 = vpop.f32.mrb[5].mxu0 }
 0x126   :  { %v2111_v4 = vmul.f32 0.088388346, %v1700_v1  ;;  %v545_v5 = vpop.f32.mrb[5].mxu1  ;;  %v2113_v6 = vmul.f32 0.088388346, %v470_v3 }
 0x127   :  { %v2115_v7 = vmul.f32 0.088388346, %v545_v5  ;;  %v748_v8 = vsel %vm720_vm0, %v2109_v2, -inf }
 0x128   :  { %v754_v9 = vsel %vm720_vm0, %v2111_v4, -inf  ;;  %v745_v11 = vsel %vm720_vm0, %v2113_v6, -inf }
 0x129   :  { %755 = vmax.xlane.f32.xlu1 %v754_v9  ;;  %749 = vmax.xlane.f32.xlu0 %v748_v8  ;;  %v751_v10 = vsel %vm720_vm0, %v2115_v7, -inf }
 0x12c   :  { %v1707_v12 = vpop.f32.mrb[6].mxu0 }
 0x12d   :  { %v1714_v13 = vpop.f32.mrb[6].mxu1  ;;  %752 = vmax.xlane.f32.xlu1 %v751_v10  ;;  %746 = vmax.xlane.f32.xlu0 %v745_v11  ;;  %v620_v14 = vpop.f32.mrb[7].mxu0  ;;  %v2129_v18 = vmul.f32 0.088388346, %v1707_v12 }
 0x12e   :  { %v695_v15 = vpop.f32.mrb[7].mxu1  ;;  %v2125_v16 = vmul.f32 0.088388346, %v620_v14  ;;  %v2133_v20 = vmul.f32 0.088388346, %v1714_v13 }
 0x12f   :  { %v2127_v17 = vmul.f32 0.088388346, %v695_v15  ;;  %v760_v22 = vsel %vm720_vm0, %v2129_v18, -inf }
 0x130   :  { %v757_v19 = vsel %vm720_vm0, %v2125_v16, -inf  ;;  %v766_v23 = vsel %vm720_vm0, %v2133_v20, -inf }
 0x131   :  { %v763_v21 = vsel %vm720_vm0, %v2127_v17, -inf  ;;  %758 = vmax.xlane.f32.xlu0 %v757_v19 }
 0x132   :  { %764 = vmax.xlane.f32.xlu1 %v763_v21 }
 0x135   :  { %761 = vmax.xlane.f32.xlu0 %v760_v22 }
 0x136   :  { %767 = vmax.xlane.f32.xlu1 %v766_v23 }
 0x1a5   :  { %v726_v24 = vpop.xlane.xlu1 %725 }
 0x1a6   :  { %v770_v25 = vsub.f32 %v2077_v41, %v726_v24  ;;  %v723_v26 = vpop.xlane.xlu0 %722 }
 0x1a7   :  { %v769_v27 = vsub.f32 %v2079_v44, %v723_v26 }
 0x1a8   :  { %v787_v28 = vmul.f32 1.442695, %v770_v25 }
 0x1a9   :  { %v785_v29 = vmul.f32 1.442695, %v769_v27  ;;  %v732_v30 = vpop.xlane.xlu1 %731 }
 0x1aa   :  { %1841 = vpow2.f32 %v787_v28  ;;  %v772_v31 = vsub.f32 %v2081_v45, %v732_v30  ;;  %v729_v32 = vpop.xlane.xlu0 %728 }
 0x1ab   :  { %v771_v33 = vsub.f32 %v2083_v47, %v729_v32  ;;  %1843 = vpow2.f32 %v785_v29 }
 0x1ac   :  { %v791_v34 = vmul.f32 1.442695, %v772_v31 }
 0x1ad   :  { %v789_v35 = vmul.f32 1.442695, %v771_v33 }
 0x1ae   :  { %1845 = vpow2.f32 %v791_v34  ;;  %v744_v36 = vpop.xlane.xlu1 %743  ;;  %v738_v37 = vpop.xlane.xlu0 %737 }
 0x1af   :  { %v776_v38 = vsub.f32 %v2095_v56, %v744_v36  ;;  %v774_v39 = vsub.f32 %v2093_v54, %v738_v37  ;;  %1847 = vpow2.f32 %v789_v35  ;;  %v88_v35 = vld [vmem:[#allocation7] sm:$0xff]  ;;  %v89_v36 = vld [vmem:[#allocation7 + $0x8] sm:$0xff] }
 0x1b1   :  { %v799_v40 = vmul.f32 1.442695, %v776_v38  ;;  %v795_v41 = vmul.f32 1.442695, %v774_v39  ;;  %v1803_v39 = vpack.c.bf16 %v89_v36, %v88_v35 }
 0x1b2   :  { %v741_v42 = vpop.xlane.xlu1 %740  ;;  %v735_v43 = vpop.xlane.xlu0 %734 }
 0x1b3   :  { %1849 = vpow2.f32 %v799_v40  ;;  %v775_v44 = vsub.f32 %v2099_v59, %v741_v42  ;;  %v773_v45 = vsub.f32 %v2097_v58, %v735_v43  ;;  %1804 = vmatprep.subr.bf16.mxu0 %v1803_v39  ;;  %v90_v42 = vld [vmem:[#allocation7 + $0x10] sm:$0xff]  ;;  %v91_v43 = vld [vmem:[#allocation7 + $0x18] sm:$0xff] }
 0x1b4   :  { %v2149_v46 = vpop.eup %1841  ;;  %1851 = vpow2.f32 %v795_v41  ;;  %1806 = vmatpush3.bf16.msra.mxu0 %v1803_v39 }
 0x1b5   :  { %v797_v47 = vmul.f32 1.442695, %v775_v44  ;;  %v793_v48 = vmul.f32 1.442695, %v773_v45  ;;  %v820_v49 = vsel %vm720_vm0, %v2149_v46, 0.0  ;;  %v2153_v50 = vpop.eup %1843  ;;  %v1807_v45 = vpack.c.bf16 %v91_v43, %v90_v42 }
 0x1b6   :  { %v756_v51 = vpop.xlane.xlu1 %755  ;;  %v750_v52 = vpop.xlane.xlu0 %749  ;;  %821 = vadd.xlane.f32.xlu0 %v820_v49  ;;  %v817_v59 = vsel %vm720_vm0, %v2153_v50, 0.0 }
 0x1b7   :  { %1853 = vpow2.f32 %v797_v47  ;;  %v780_v53 = vsub.f32 %v2111_v4, %v756_v51  ;;  %v778_v54 = vsub.f32 %v2109_v2, %v750_v52  ;;  %1808 = vmatprep.subr.bf16.mxu1 %v1807_v45  ;;  %v92_v47 = vld [vmem:[#allocation7 + $0x20] sm:$0xff]  ;;  %v94_v51 = vld [vmem:[#allocation7 + $0x30] sm:$0xff]  ;;  %v95_v52 = vld [vmem:[#allocation7 + $0x38] sm:$0xff] }
 0x1b8   :  { %v2157_v55 = vpop.eup %1845  ;;  %1855 = vpow2.f32 %v793_v48  ;;  %1810 = vmatpush3.bf16.msra.mxu1 %v1807_v45  ;;  %v93_v48 = vld [vmem:[#allocation7 + $0x28] sm:$0xff] }
 0x1b9   :  { %v807_v56 = vmul.f32 1.442695, %v780_v53  ;;  %v803_v57 = vmul.f32 1.442695, %v778_v54  ;;  %v826_v58 = vsel %vm720_vm0, %v2157_v55, 0.0  ;;  %v2163_v60 = vpop.eup %1847  ;;  %v1811_v49 = vpack.c.bf16 %v93_v48, %v92_v47 }
 0x1ba   :  { %v753_v61 = vpop.xlane.xlu1 %752  ;;  %827 = vadd.xlane.f32.xlu1 %v826_v58  ;;  %v747_v62 = vpop.xlane.xlu0 %746  ;;  %818 = vadd.xlane.f32.xlu0 %v817_v59  ;;  %v823_v4 = vsel %vm720_vm0, %v2163_v60, 0.0  ;;  %v1815_v53 = vpack.c.bf16 %v95_v52, %v94_v51 }
 0x1bb   :  { %1857 = vpow2.f32 %v807_v56  ;;  %v779_v63 = vsub.f32 %v2115_v7, %v753_v61  ;;  %v777_v0 = vsub.f32 %v2113_v6, %v747_v62  ;;  %1812 = vmatprep.subr.bf16.mxu0 %v1811_v49 }
 0x1bc   :  { %1859 = vpow2.f32 %v803_v57  ;;  %1816 = vmatprep.subr.bf16.mxu1 %v1815_v53 }
 0x1bd   :  { %v2167_v1 = vpop.eup %1849  ;;  %v805_v2 = vmul.f32 1.442695, %v779_v63  ;;  %v801_v3 = vmul.f32 1.442695, %v777_v0  ;;  %v96_v0 = vld [vmem:[#allocation7 + $0x40] sm:$0xff] }
 0x1be   :  { %v2171_v5 = vpop.eup %1851  ;;  %824 = vadd.xlane.f32.xlu1 %v823_v4  ;;  %v759_v8 = vpop.xlane.xlu0 %758  ;;  %v838_v13 = vsel %vm720_vm0, %v2167_v1, 0.0 }
 0x1bf   :  { %1861 = vpow2.f32 %v805_v2  ;;  %v765_v9 = vpop.xlane.xlu1 %764  ;;  %v781_v10 = vsub.f32 %v2125_v16, %v759_v8  ;;  %v832_v7 = vsel %vm720_vm0, %v2171_v5, 0.0  ;;  %v97_v2 = vld [vmem:[#allocation7 + $0x48] sm:$0xff] }
 0x1c0   :  { %1863 = vpow2.f32 %v801_v3  ;;  %v783_v6 = vsub.f32 %v2127_v17, %v765_v9  ;;  %833 = vadd.xlane.f32.xlu0 %v832_v7 }
 0x1c1   :  { %v2177_v11 = vpop.eup %1853  ;;  %v809_v12 = vmul.f32 1.442695, %v781_v10 }
 0x1c2   :  { %v2181_v14 = vpop.eup %1855  ;;  %v813_v15 = vmul.f32 1.442695, %v783_v6  ;;  %839 = vadd.xlane.f32.xlu1 %v838_v13  ;;  %v762_v19 = vpop.xlane.xlu0 %761  ;;  %v835_v25 = vsel %vm720_vm0, %v2177_v11, 0.0  ;;  %v1819_v6 = vpack.c.bf16 %v97_v2, %v96_v0  ;;  %v99_v13 = vld [vmem:[#allocation7 + $0x58] sm:$0xff] }
 0x1c3   :  { %1865 = vpow2.f32 %v809_v12  ;;  %v768_v16 = vpop.xlane.xlu1 %767  ;;  %v782_v21 = vsub.f32 %v2129_v18, %v762_v19  ;;  %v829_v22 = vsel %vm720_vm0, %v2181_v14, 0.0  ;;  %v98_v12 = vld [vmem:[#allocation7 + $0x50] sm:$0xff] }
 0x1c4   :  { %1867 = vpow2.f32 %v813_v15  ;;  %v784_v17 = vsub.f32 %v2133_v20, %v768_v16  ;;  %830 = vadd.xlane.f32.xlu0 %v829_v22  ;;  %v1823_v22 = vpack.c.bf16 %v99_v13, %v98_v12 }
 0x1c5   :  { %v2187_v23 = vpop.eup %1857  ;;  %v811_v24 = vmul.f32 1.442695, %v782_v21 }
 0x1c6   :  { %v2191_v26 = vpop.eup %1859  ;;  %v815_v27 = vmul.f32 1.442695, %v784_v17  ;;  %836 = vadd.xlane.f32.xlu1 %v835_v25  ;;  %v850_v20 = vsel %vm720_vm0, %v2187_v23, 0.0  ;;  %v101_v25 = vld [vmem:[#allocation7 + $0x68] sm:$0xff] }
 0x1c7   :  { %1869 = vpow2.f32 %v811_v24  ;;  %v844_v18 = vsel %vm720_vm0, %v2191_v26, 0.0  ;;  %v100_v24 = vld [vmem:[#allocation7 + $0x60] sm:$0xff] }
 0x1c8   :  { %1871 = vpow2.f32 %v815_v27  ;;  %845 = vadd.xlane.f32.xlu0 %v844_v18  ;;  %v1827_v35 = vpack.c.bf16 %v101_v25, %v100_v24 }
 0x1c9   :  { %v2195_v28 = vpop.eup %1861 }
 0x1ca   :  { %v2199_v29 = vpop.eup %1863  ;;  %851 = vadd.xlane.f32.xlu1 %v850_v20  ;;  %v847_v32 = vsel %vm720_vm0, %v2195_v28, 0.0  ;;  %v102_v20 = vld [vmem:[#allocation7 + $0x70] sm:$0xff] }
 0x1cb   :  { %v841_v30 = vsel %vm720_vm0, %v2199_v29, 0.0 }
 0x1cc   :  { %842 = vadd.xlane.f32.xlu0 %v841_v30  ;;  %v103_v30 = vld [vmem:[#allocation7 + $0x78] sm:$0xff] }
 0x1cd   :  { %v2203_v31 = vpop.eup %1865 }
 0x1ce   :  { %v2207_v33 = vpop.eup %1867  ;;  %848 = vadd.xlane.f32.xlu1 %v847_v32  ;;  %v853_v34 = vsel %vm720_vm0, %v2203_v31, 0.0 }
 0x1cf   :  { %v859_v38 = vsel %vm720_vm0, %v2207_v33, 0.0 }
 0x1d0   :  { %854 = vadd.xlane.f32.xlu0 %v853_v34 }
 0x1d1   :  { %v2211_v37 = vpop.eup %1869 }
 0x1d2   :  { %v2215_v40 = vpop.eup %1871  ;;  %860 = vadd.xlane.f32.xlu1 %v859_v38  ;;  %v856_v41 = vsel %vm720_vm0, %v2211_v37, 0.0 }
 0x1d3   :  { %v862_v44 = vsel %vm720_vm0, %v2215_v40, 0.0 }
 0x1d4   :  { %857 = vadd.xlane.f32.xlu0 %v856_v41  ;;  %v1831_v41 = vpack.c.bf16 %v103_v30, %v102_v20 }
 0x1d6   :  { %863 = vadd.xlane.f32.xlu1 %v862_v44 }
 0x243   :  { %v822_v54 = vpop.xlane.xlu0 %821 }
 0x244   :  { %1873 = vrcp.f32 %v822_v54 }
 0x247   :  { %v828_v56 = vpop.xlane.xlu1 %827  ;;  %v819_v57 = vpop.xlane.xlu0 %818 }
 0x248   :  { %1875 = vrcp.f32 %v819_v57 }
 0x249   :  { %1877 = vrcp.f32 %v828_v56 }
 0x24b   :  { %v825_v58 = vpop.xlane.xlu1 %824 }
 0x24c   :  { %1879 = vrcp.f32 %v825_v58 }
 0x24d   :  { %v834_v59 = vpop.xlane.xlu0 %833 }
 0x24e   :  { %1881 = vrcp.f32 %v834_v59  ;;  %v1874_v63 = vpop.eup %1873 }
 0x24f   :  { %v840_v61 = vpop.xlane.xlu1 %839  ;;  %v868_v10 = vmul.f32 %v1874_v63, %v2149_v46 }
 0x251   :  { %v831_v62 = vpop.xlane.xlu0 %830 }
 0x252   :  { %1883 = vrcp.f32 %v831_v62  ;;  %v1876_v3 = vpop.eup %1875 }
 0x253   :  { %1885 = vrcp.f32 %v840_v61  ;;  %v837_v4 = vpop.xlane.xlu1 %836  ;;  %v866_v8 = vmul.f32 %v1876_v3, %v2153_v50  ;;  %v1878_v9 = vpop.eup %1877 }
 0x254   :  { %1887 = vrcp.f32 %v837_v4  ;;  %v872_v21 = vmul.f32 %v1878_v9, %v2157_v55 }
 0x255   :  { %v846_v7 = vpop.xlane.xlu0 %845  ;;  %1719 = vmatprep.mubr.msk.f32.mxu0 %vm720_vm0, %v866_v8 }
 0x256   :  { %v1880_v15 = vpop.eup %1879  ;;  %1720 = vmatmul.mubr.msk.f32.vlgmr.msra.gmra.mrb[8].mxu0 %vm720_vm0, %v868_v10  ;;  %1889 = vrcp.f32 %v846_v7 }
 0x257   :  { %v852_v19 = vpop.xlane.xlu1 %851  ;;  %v870_v16 = vmul.f32 %v1880_v15, %v2163_v60  ;;  %1814 = vmatpush3.bf16.msra.mxu0 %v1811_v49 }
 0x258   :  { %1820 = vmatprep.subr.bf16.mxu0 %v1819_v6  ;;  %v1882_v46 = vpop.eup %1881 }
 0x259   :  { %v843_v50 = vpop.xlane.xlu0 %842  ;;  %1726 = vmatprep.mubr.msk.f32.mxu1 %vm720_vm0, %v870_v16  ;;  %v876_v34 = vmul.f32 %v1882_v46, %v2171_v5 }
 0x25a   :  { %1891 = vrcp.f32 %v843_v50  ;;  %1727 = vmatmul.mubr.msk.f32.vlgmr.msra.gmra.mrb[8].mxu1 %vm720_vm0, %v872_v21 }
 0x25b   :  { %1893 = vrcp.f32 %v852_v19  ;;  %v849_v17 = vpop.xlane.xlu1 %848  ;;  %1818 = vmatpush3.bf16.msra.mxu1 %v1815_v53 }
 0x25c   :  { %v1884_v27 = vpop.eup %1883  ;;  %1895 = vrcp.f32 %v849_v17  ;;  %1824 = vmatprep.subr.bf16.mxu1 %v1823_v22 }
 0x25d   :  { %v1886_v55 = vpop.eup %1885  ;;  %v855_v60 = vpop.xlane.xlu0 %854  ;;  %v874_v18 = vmul.f32 %v1884_v27, %v2181_v14 }
 0x25e   :  { %v1888_v32 = vpop.eup %1887  ;;  %1897 = vrcp.f32 %v855_v60  ;;  %v880_v39 = vmul.f32 %v1886_v55, %v2167_v1 }
 0x25f   :  { %1733 = vmatprep.mubr.msk.f32.mxu0 %vm720_vm0, %v874_v18  ;;  %v861_v36 = vpop.xlane.xlu1 %860  ;;  %v878_v38 = vmul.f32 %v1888_v32, %v2177_v11 }
 0x260   :  { %1899 = vrcp.f32 %v861_v36  ;;  %1734 = vmatmul.mubr.msk.f32.vlgmr.msra.gmra.mrb[10].mxu0 %vm720_vm0, %v876_v34  ;;  %v1890_v5 = vpop.eup %1889 }
 0x261   :  { %v858_v42 = vpop.xlane.xlu0 %857  ;;  %1740 = vmatprep.mubr.msk.f32.mxu1 %vm720_vm0, %v878_v38  ;;  %1822 = vmatpush3.bf16.msra.mxu0 %v1819_v6  ;;  %v884_v45 = vmul.f32 %v1890_v5, %v2191_v26 }
 0x262   :  { %1901 = vrcp.f32 %v858_v42  ;;  %1741 = vmatmul.mubr.msk.f32.vlgmr.msra.gmra.mrb[10].mxu1 %vm720_vm0, %v880_v39  ;;  %1828 = vmatprep.subr.bf16.mxu0 %v1827_v35 }
 0x263   :  { %v864_v14 = vpop.xlane.xlu1 %863  ;;  %1826 = vmatpush3.bf16.msra.mxu1 %v1823_v22 }
 0x264   :  { %v1892_v43 = vpop.eup %1891  ;;  %1903 = vrcp.f32 %v864_v14  ;;  %1832 = vmatprep.subr.bf16.mxu1 %v1831_v41 }
 0x265   :  { %v1894_v11 = vpop.eup %1893  ;;  %v882_v1 = vmul.f32 %v1892_v43, %v2199_v29 }
 0x266   :  { %v1896_v44 = vpop.eup %1895  ;;  %v888_v49 = vmul.f32 %v1894_v11, %v2187_v23 }
 0x267   :  { %1747 = vmatprep.mubr.msk.f32.mxu0 %vm720_vm0, %v882_v1  ;;  %v886_v47 = vmul.f32 %v1896_v44, %v2195_v28 }
 0x268   :  { %v1898_v48 = vpop.eup %1897  ;;  %1748 = vmatmul.mubr.msk.f32.vlgmr.msra.gmra.mrb[12].mxu0 %vm720_vm0, %v884_v45 }
 0x269   :  { %1754 = vmatprep.mubr.msk.f32.mxu1 %vm720_vm0, %v886_v47  ;;  %v890_v51 = vmul.f32 %v1898_v48, %v2203_v31  ;;  %1830 = vmatpush3.bf16.msra.mxu0 %v1827_v35 }
 0x26a   :  { %v1900_v52 = vpop.eup %1899  ;;  %1755 = vmatmul.mubr.msk.f32.vlgmr.msra.gmra.mrb[12].mxu1 %vm720_vm0, %v888_v49 }
 0x26b   :  { %1761 = vmatprep.mubr.msk.f32.mxu0 %vm720_vm0, %v890_v51  ;;  %1834 = vmatpush3.bf16.msra.mxu1 %v1831_v41  ;;  %v894_v26 = vmul.f32 %v1900_v52, %v2207_v33 }
 0x26c   :  { %v1902_v29 = vpop.eup %1901 }
 0x26d   :  { %v892_v28 = vmul.f32 %v1902_v29, %v2211_v37  ;;  %1768 = vmatprep.mubr.msk.f32.mxu1 %vm720_vm0, %v894_v26 }
 0x26e   :  { %v1904_v23 = vpop.eup %1903 }
 0x26f   :  { %v896_v53 = vmul.f32 %v1904_v23, %v2215_v40  ;;  %1762 = vmatmul.mubr.msk.f32.vlgmr.msra.gmra.mrb[14].mxu0 %vm720_vm0, %v892_v28 }
 0x271   :  { %1769 = vmatmul.mubr.msk.f32.vlgmr.msra.gmra.mrb[14].mxu1 %vm720_vm0, %v896_v53 }
 0x329   :  { %v1721_v31 = vpop.f32.mrb[8].mxu0 }
 0x32a   :  { %1546 = vst [vmem:[#allocation8 + $0x8] sm:$0xff] %v1721_v31  ;;  %v969_v54 = vpop.f32.mrb[9].mxu0 }
 0x32b   :  { %1545 = vst [vmem:[#allocation8] sm:$0xff] %v969_v54 }
 0x32d   :  { %v1728_v56 = vpop.f32.mrb[8].mxu1 }
 0x32e   :  { %1548 = vst [vmem:[#allocation8 + $0x18] sm:$0xff] %v1728_v56  ;;  %v1050_v57 = vpop.f32.mrb[9].mxu1 }
 0x32f   :  { %1547 = vst [vmem:[#allocation8 + $0x10] sm:$0xff] %v1050_v57 }
 0x333   :  { %v1735_v33 = vpop.f32.mrb[10].mxu0 }
 0x334   :  { %1550 = vst [vmem:[#allocation8 + $0x28] sm:$0xff] %v1735_v33  ;;  %v1131_v37 = vpop.f32.mrb[11].mxu0 }
 0x335   :  { %1549 = vst [vmem:[#allocation8 + $0x20] sm:$0xff] %v1131_v37  ;;  %v1742_v58 = vpop.f32.mrb[10].mxu1 }
 0x336   :  { %1552 = vst [vmem:[#allocation8 + $0x38] sm:$0xff] %v1742_v58  ;;  %v1212_v59 = vpop.f32.mrb[11].mxu1 }
 0x337   :  { %1551 = vst [vmem:[#allocation8 + $0x30] sm:$0xff] %v1212_v59 }
 0x33b   :  { %v1749_v40 = vpop.f32.mrb[12].mxu0 }
 0x33c   :  { %1554 = vst [vmem:[#allocation8 + $0x48] sm:$0xff] %v1749_v40  ;;  %v1293_v61 = vpop.f32.mrb[13].mxu0 }
 0x33d   :  { %1553 = vst [vmem:[#allocation8 + $0x40] sm:$0xff] %v1293_v61  ;;  %v1756_v62 = vpop.f32.mrb[12].mxu1 }
 0x33e   :  { %1556 = vst [vmem:[#allocation8 + $0x58] sm:$0xff] %v1756_v62  ;;  %v1374_v63 = vpop.f32.mrb[13].mxu1 }
 0x33f   :  { %1555 = vst [vmem:[#allocation8 + $0x50] sm:$0xff] %v1374_v63 }
 0x342   :  { %v1763_v0 = vpop.f32.mrb[14].mxu0 }
 0x343   :  { %1558 = vst [vmem:[#allocation8 + $0x68] sm:$0xff] %v1763_v0  ;;  %v1455_v2 = vpop.f32.mrb[15].mxu0 }
 0x344   :  { %1557 = vst [vmem:[#allocation8 + $0x60] sm:$0xff] %v1455_v2  ;;  %v1770_v3 = vpop.f32.mrb[14].mxu1 }
 0x345   :  { %1560 = vst [vmem:[#allocation8 + $0x78] sm:$0xff] %v1770_v3  ;;  %v1536_v4 = vpop.f32.mrb[15].mxu1 }
 0x346   :  { %1559 = vst [vmem:[#allocation8 + $0x70] sm:$0xff] %v1536_v4 }
 0x347   :  { %1982 = shalt.err (!%p1979_p0)
}
 0x348   :  { %s1983_s27 = scalar_lea.hbm %s2271_s3, 2048 }
 0x349   :  { %p1984_p1 = scmp.ne.s32.totalorder %s2271_s3, %s1983_s27  ;;  %p1987_p2 = scmp.lt.u32.totalorder %s1983_s27, %s2271_s3 }
 0x34b   :  { %p1989_p3 = pnand %p1987_p2, %p1984_p1 }
 0x34d   :  { %1992 = shalt.err (!%p1989_p3)
}
 0x34e   :  { %1572 = dma.vmem_to_hbm [thread:$0]  %s1567_s21, 2048, %s2271_s3, [#allocation4], %s2001_s24, %s2001_s24, %s2002_s25  }
 0x34f   :  { %1997 = dma.done.wait [#allocation4], 2048  }
 0x350   :  { %1998 = vsyncadd [#allocation4], 4294965248 }
 0x351   :  { %1576 = vsyncpa [#allocation3], 1 }
 0x352   :  { %1577 = vsyncpa [#allocation6], 1 }
 0x353   :  { %1578 = vsyncpa [#allocation4], 1 }

</bundles_post_ra>
